<compile_context>
chip_gen: v7x
topology: tpu7x:2x2x1
jax: 0.10.0
libtpu: 0.0.40
codegen_flags: <defaults>
</compile_context>

<pallas_src>
import functools

import jax
import jax.numpy as jnp
from jax import lax
from jax.experimental import pallas as pl
from jax.experimental.pallas import tpu as pltpu


def _focal_loss_kernel(x_ref, t_ref, o_ref, *, alpha, gamma, block_n, n_total):
    x = x_ref[...].astype(jnp.float32)          # (TN, C) logits (upcast in-kernel)
    t = t_ref[...]                              # (TN, 1) int32 targets

    # Numerically-stable softmax pieces (computed once, reused for ce and pt).
    m = jnp.max(x, axis=-1, keepdims=True)                      # (TN, 1)
    e = jnp.exp(x - m)                                          # (TN, C)
    sumexp = jnp.sum(e, axis=-1, keepdims=True)                 # (TN, 1)

    # Gather target-class logit / exp via a one-hot mask (no dynamic gather on TPU).
    col = lax.broadcasted_iota(jnp.int32, x.shape, 1)           # (TN, C)
    onehot = col == t
    tgt_logit = jnp.sum(jnp.where(onehot, x, 0.0), axis=-1, keepdims=True)  # (TN, 1)
    e_tgt = jnp.sum(jnp.where(onehot, e, 0.0), axis=-1, keepdims=True)      # (TN, 1)

    ce = (m + jnp.log(sumexp)) - tgt_logit                      # per-sample CE
    pt = e_tgt / sumexp                                         # == exp(-ce), reuses e

    base = jnp.maximum(1.0 - pt, 0.0)                           # clamp: avoid pow(neg)
    g = float(gamma)
    if g.is_integer() and g >= 0:
        w = jnp.ones_like(base)
        for _ in range(int(g)):                                 # integer power on the VPU
            w = w * base
    else:
        w = base ** jnp.float32(g)

    focal = jnp.float32(alpha) * w * ce                         # (TN, 1)

    # Mask rows past the end of the array (tail block).
    i = pl.program_id(0)
    row = lax.broadcasted_iota(jnp.int32, focal.shape, 0)
    valid = (i * block_n + row) < n_total
    o_ref[...] = jnp.where(valid, focal, 0.0)


def _pick_block_n(n, c, itemsize):
    """Largest row tile that keeps the double-buffered logits tile modest in VMEM."""
    min_rows = {4: 8, 2: 16, 1: 32}.get(itemsize, 8)   # native sublane tile per dtype
    target_bytes = 4 * 1024 * 1024                     # per logits buffer (x2 for dbl-buf)
    bn = target_bytes // max(1, c * itemsize)
    bn = max(min_rows, min(bn, 1024))
    bn = (bn // min_rows) * min_rows
    n_pad = ((n + min_rows - 1) // min_rows) * min_rows
    return min(bn, n_pad)


def focal_loss(inputs, targets, alpha=0.5, gamma=2, block_n=None):
    """inputs: (N, C) float logits (any float dtype); targets: (N,) ints. Returns scalar."""
    N, C = inputs.shape
    itemsize = jnp.dtype(inputs.dtype).itemsize
    if block_n is None:
        block_n = _pick_block_n(N, C, itemsize)
    t2d = targets.astype(jnp.int32).reshape(N, 1)

    kernel = functools.partial(
        _focal_loss_kernel,
        alpha=float(alpha),
        gamma=float(gamma),
        block_n=block_n,
        n_total=N,
    )

    per_row = pl.pallas_call(
        kernel,
        out_shape=jax.ShapeDtypeStruct((N, 1), jnp.float32),
        grid_spec=pltpu.PrefetchScalarGridSpec(
            num_scalar_prefetch=0,
            grid=(pl.cdiv(N, block_n),),
            in_specs=[
                pl.BlockSpec((block_n, C), lambda i: (i, 0)),
                pl.BlockSpec((block_n, 1), lambda i: (i, 0)),
            ],
            out_specs=pl.BlockSpec((block_n, 1), lambda i: (i, 0)),
        ),
        compiler_params=pltpu.CompilerParams(
            dimension_semantics=("parallel",),          # every block independent (megacore-friendly)
            vmem_limit_bytes=32 * 1024 * 1024,          # explicit, fits v5e/v6e/v7x budgets
        ),
    )(inputs, t2d)

    # Tiny final reduction (mean over exactly N per-row values) in plain JAX.
    return jnp.sum(per_row) / jnp.float32(N)


def _focal_loss_ref(inputs, targets, alpha=0.5, gamma=2):
    logp = jax.nn.log_softmax(inputs.astype(jnp.float32), axis=-1)
    ce = -jnp.take_along_axis(logp, targets[:, None].astype(jnp.int32), axis=-1)[:, 0]
    pt = jnp.exp(-ce)
    return jnp.mean(alpha * (1.0 - pt) ** gamma * ce)


if __name__ == "__main__":
    key = jax.random.PRNGKey(0)
    k1, k2, k3, k4 = jax.random.split(key, 4)

    # Case 1: small f32, exact tiling (auto block_n).
    N, C = 16, 8
    logits = jax.random.normal(k1, (N, C), dtype=jnp.float32)
    targets = jax.random.randint(k2, (N,), 0, C, dtype=jnp.int32)
    loss = jax.block_until_ready(focal_loss(logits, targets, alpha=0.5, gamma=2))
    ref = _focal_loss_ref(logits, targets, alpha=0.5, gamma=2)
    assert jnp.allclose(loss, ref, atol=1e-5, rtol=1e-5), (loss, ref)

    # Case 2: N not divisible by the tile -> exercises the masked tail block.
    N2 = 24
    logits2 = jax.random.normal(k3, (N2, C), dtype=jnp.float32)
    targets2 = jax.random.randint(k4, (N2,), 0, C, dtype=jnp.int32)
    loss2 = jax.block_until_ready(focal_loss(logits2, targets2, alpha=0.5, gamma=2, block_n=16))
    ref2 = _focal_loss_ref(logits2, targets2, alpha=0.5, gamma=2)
    assert jnp.allclose(loss2, ref2, atol=1e-5, rtol=1e-5), (loss2, ref2)

    # Case 3: bf16 logits, no wrapper upcast (kernel upcasts in VMEM).
    logits_bf16 = logits.astype(jnp.bfloat16)
    loss3 = jax.block_until_ready(focal_loss(logits_bf16, targets, alpha=0.5, gamma=2))
    ref3 = _focal_loss_ref(logits_bf16, targets, alpha=0.5, gamma=2)
    assert jnp.allclose(loss3, ref3, atol=1e-5, rtol=1e-5), (loss3, ref3)

    print("KERNEL_OK")
</pallas_src>

<mosaic_0001>
module attributes {stable_mosaic.version = 11 : i64} {
  func.func @_focal_loss_kernel(%arg0: i32, %arg1: memref<16x8xf32, #tpu.memory_space<vmem>>, %arg2: memref<16x1xi32, #tpu.memory_space<vmem>>, %arg3: memref<16x1xf32, #tpu.memory_space<vmem>>) attributes {dimension_semantics = [#tpu.dimension_semantics<parallel>], iteration_bounds = array<i64: 1>, scalar_prefetch = 0 : i64, scratch_operands = 0 : i64, tpu.core_type = #tpu.core_type<tc>, window_params = [{transform_indices = @transform_0, window_bounds = array<i64: 16, 8>}, {transform_indices = @transform_1, window_bounds = array<i64: 16, 1>}, {transform_indices = @transform_2, window_bounds = array<i64: 16, 1>}]} {
    %c0 = arith.constant 0 : index
    %c0_0 = arith.constant 0 : index
    %0 = vector.load %arg1[%c0, %c0_0] : memref<16x8xf32, #tpu.memory_space<vmem>>, vector<16x8xf32>
    %c0_1 = arith.constant 0 : index
    %c0_2 = arith.constant 0 : index
    %1 = vector.load %arg2[%c0_1, %c0_2] : memref<16x1xi32, #tpu.memory_space<vmem>>, vector<16x1xi32>
    %cst = arith.constant dense<0xFF800000> : vector<16xf32>
    %2 = vector.multi_reduction <maximumf>, %0, %cst [1] : vector<16x8xf32> to vector<16xf32>
    %3 = vector.shape_cast %2 : vector<16xf32> to vector<16x1xf32>
    %4 = vector.broadcast %3 : vector<16x1xf32> to vector<16x8xf32>
    %5 = arith.subf %0, %4 : vector<16x8xf32>
    %6 = math.exp %5 : vector<16x8xf32>
    %cst_3 = arith.constant dense<0.000000e+00> : vector<16xf32>
    %7 = vector.multi_reduction <add>, %6, %cst_3 [1] : vector<16x8xf32> to vector<16xf32>
    %8 = vector.shape_cast %7 : vector<16xf32> to vector<16x1xf32>
    %9 = tpu.iota {dimensions = array<i32: 1>} : vector<16x8xi32>
    %10 = vector.broadcast %1 : vector<16x1xi32> to vector<16x8xi32>
    %11 = arith.cmpi eq, %9, %10 : vector<16x8xi32>
    %cst_4 = arith.constant 0.000000e+00 : f32
    %12 = vector.broadcast %cst_4 : f32 to vector<16x8xf32>
    %13 = arith.select %11, %0, %12 : vector<16x8xi1>, vector<16x8xf32>
    %cst_5 = arith.constant dense<0.000000e+00> : vector<16xf32>
    %14 = vector.multi_reduction <add>, %13, %cst_5 [1] : vector<16x8xf32> to vector<16xf32>
    %15 = vector.shape_cast %14 : vector<16xf32> to vector<16x1xf32>
    %cst_6 = arith.constant 0.000000e+00 : f32
    %16 = vector.broadcast %cst_6 : f32 to vector<16x8xf32>
    %17 = arith.select %11, %6, %16 : vector<16x8xi1>, vector<16x8xf32>
    %cst_7 = arith.constant dense<0.000000e+00> : vector<16xf32>
    %18 = vector.multi_reduction <add>, %17, %cst_7 [1] : vector<16x8xf32> to vector<16xf32>
    %19 = vector.shape_cast %18 : vector<16xf32> to vector<16x1xf32>
    %20 = math.log %8 : vector<16x1xf32>
    %21 = arith.addf %3, %20 : vector<16x1xf32>
    %22 = arith.subf %21, %15 : vector<16x1xf32>
    %23 = arith.divf %19, %8 : vector<16x1xf32>
    %cst_8 = arith.constant 1.000000e+00 : f32
    %24 = vector.broadcast %cst_8 : f32 to vector<16x1xf32>
    %25 = arith.subf %24, %23 : vector<16x1xf32>
    %cst_9 = arith.constant 0.000000e+00 : f32
    %26 = vector.broadcast %cst_9 : f32 to vector<16x1xf32>
    %27 = arith.maximumf %25, %26 : vector<16x1xf32>
    %cst_10 = arith.constant 1.000000e+00 : f32
    %28 = vector.broadcast %cst_10 : f32 to vector<16x1xf32>
    %29 = arith.mulf %28, %27 : vector<16x1xf32>
    %30 = arith.mulf %29, %27 : vector<16x1xf32>
    %cst_11 = arith.constant 5.000000e-01 : f32
    %31 = vector.broadcast %cst_11 : f32 to vector<16x1xf32>
    %32 = arith.mulf %31, %30 : vector<16x1xf32>
    %33 = arith.mulf %32, %22 : vector<16x1xf32>
    %34 = tpu.iota {dimensions = array<i32: 0>} : vector<16x1xi32>
    %c16_i32 = arith.constant 16 : i32
    %35 = arith.muli %arg0, %c16_i32 : i32
    %36 = vector.broadcast %35 : i32 to vector<16x1xi32>
    %37 = arith.addi %36, %34 : vector<16x1xi32>
    %c16_i32_12 = arith.constant 16 : i32
    %38 = vector.broadcast %c16_i32_12 : i32 to vector<16x1xi32>
    %39 = arith.cmpi slt, %37, %38 : vector<16x1xi32>
    %cst_13 = arith.constant 0.000000e+00 : f32
    %40 = vector.broadcast %cst_13 : f32 to vector<16x1xf32>
    %41 = arith.select %39, %33, %40 : vector<16x1xi1>, vector<16x1xf32>
    %c0_14 = arith.constant 0 : index
    %c0_15 = arith.constant 0 : index
    %42 = vector.load %arg3[%c0_14, %c0_15] : memref<16x1xf32, #tpu.memory_space<vmem>>, vector<16x1xf32>
    tpu.vector_store %arg3[%c0_14, %c0_15], %41 {strides = array<i32>} : memref<16x1xf32, #tpu.memory_space<vmem>>, vector<16x1xf32>,
    return
  }
  func.func @transform_0(%arg0: i32) -> (i32, i32) {
    %c0_i32 = arith.constant 0 : i32
    %c0_i32_0 = arith.constant 0 : i32
    return %arg0, %c0_i32 : i32, i32
  }
  func.func @transform_1(%arg0: i32) -> (i32, i32) {
    %c0_i32 = arith.constant 0 : i32
    %c0_i32_0 = arith.constant 0 : i32
    return %arg0, %c0_i32 : i32, i32
  }
  func.func @transform_2(%arg0: i32) -> (i32, i32) {
    %c0_i32 = arith.constant 0 : i32
    %c0_i32_0 = arith.constant 0 : i32
    return %arg0, %c0_i32 : i32, i32
  }
}

</mosaic_0001>

<bundles_post_ra>
// kernel: tpu_custom_call.1
= control target key start
LH: loop header
LB: loop body
LE: loop exit
PB: predicated region body
PF: predicated region fallthrough
CT: control target
= control target key end

     0   :  { %vm15_vm0 = vcmask 64512   ;;  %v115_v2 = vmov 0   ;;  %v34_v12 = vlaneseq  ;;  %vm93_vm3 = vcmask 7168   ;;  %s157_s0 = inlined_call_operand.vmem [shape: f32[16,8], index: 0, kind: input, shape index: {}]   ;;  %s158_s1 = inlined_call_operand.vmem [shape: s32[16,1], index: 1, kind: input, shape index: {}]   ;;  %s159_s2 = inlined_call_operand.vmem [shape: f32[16,1], index: 2, kind: output, shape index: {}]  }
   0x1   :  { %v11_v0 = vld [vmem:[%s157_s0] sm:$0xff]  ;;  %v12_v1 = vld [vmem:[%s157_s0 + $0x8] sm:$0xff]  ;;  %101 = vset.pattern.permute.xlu1 %v115_v2  ;;  %102 = vset.pattern.permute.xlu0 %v115_v2 }
   0x2   :  { %v13_v3 = vld [vmem:[%s158_s1] sm:$0xff]  ;;  %v16_v4 = vsel %vm15_vm0, %v11_v0, -inf  ;;  %v14_v5 = vld [vmem:[%s158_s1 + $0x8] sm:$0xff]  ;;  %v19_v6 = vsel %vm15_vm0, %v12_v1, -inf  ;;  %v35_v15 = vand.u32 127, %v34_v12 }
   0x3   :  { %37 = vperm.xlu1 %101, %v13_v3   ;;  %17 = vmax.xlane.f32.xlu0 %v16_v4 }
   0x7   :  { %40 = vperm.xlu1 %101, %v14_v5   ;;  %20 = vmax.xlane.f32.xlu0 %v19_v6 }
  0x82   :  { %v38_v14 = vpop.permute.xlu1 %37 }
  0x83   :  { %vm42_vm1 = vcmp.eq.s32.totalorder %v35_v15, %v38_v14 }
  0x84   :  { %v44_v24 = vsel %vm42_vm1, %v11_v0, 0.0 }
  0x85   :  { %v46_v26 = vsel %vm15_vm0, %v44_v24, 0.0 }
  0x86   :  { %v41_v17 = vpop.permute.xlu1 %40 }
  0x87   :  { %vm43_vm2 = vcmp.eq.s32.totalorder %v35_v15, %v41_v17 }
  0x88   :  { %v45_v27 = vsel %vm43_vm2, %v12_v1, 0.0 }
  0x89   :  { %v49_v28 = vsel %vm15_vm0, %v45_v27, 0.0 }
  0x90   :  { %v18_v7 = vpop.xlane.xlu0 %17 }
  0x91   :  { %v22_v8 = vsub.f32 %v11_v0, %v18_v7 }
  0x93   :  { %v24_v9 = vmul.f32 1.442695, %v22_v8 }
  0x94   :  { %v21_v10 = vpop.xlane.xlu0 %20 }
  0x95   :  { %103 = vpow2.f32 %v24_v9  ;;  %v23_v11 = vsub.f32 %v12_v1, %v21_v10 }
  0x97   :  { %v26_v13 = vmul.f32 1.442695, %v23_v11 }
  0x99   :  { %105 = vpow2.f32 %v26_v13 }
  0x9f   :  { %v104_v16 = vpop.eup %103 }
  0xa0   :  { %v28_v18 = vsel %vm15_vm0, %v104_v16, 0.0  ;;  %v52_v19 = vsel %vm42_vm1, %v104_v16, 0.0 }
  0xa1   :  { %29 = vadd.xlane.f32.xlu0 %v28_v18  ;;  %v54_v21 = vsel %vm15_vm0, %v52_v19, 0.0 }
  0xa3   :  { %v106_v20 = vpop.eup %105 }
  0xa4   :  { %v31_v22 = vsel %vm15_vm0, %v106_v20, 0.0  ;;  %v53_v23 = vsel %vm43_vm2, %v106_v20, 0.0 }
  0xa5   :  { %55 = vadd.xlane.f32.xlu0 %v54_v21  ;;  %32 = vadd.xlane.f32.xlu1 %v31_v22  ;;  %v57_v25 = vsel %vm15_vm0, %v53_v23, 0.0 }
  0xa9   :  { %58 = vadd.xlane.f32.xlu0 %v57_v25 }
  0xad   :  { %47 = vadd.xlane.f32.xlu0 %v46_v26 }
  0xb1   :  { %50 = vadd.xlane.f32.xlu0 %v49_v28 }
 0x12e   :  { %v30_v29 = vpop.xlane.xlu0 %29 }
 0x12f   :  { %107 = vlog2.f32 %v30_v29 }
 0x130   :  { %109 = vrcp.f32 %v30_v29 }
 0x132   :  { %v33_v30 = vpop.xlane.xlu1 %32  ;;  %v56_v31 = vpop.xlane.xlu0 %55 }
 0x133   :  { %111 = vlog2.f32 %v33_v30 }
 0x134   :  { %113 = vrcp.f32 %v33_v30 }
 0x136   :  { %v59_v34 = vpop.xlane.xlu0 %58 }
 0x139   :  { %v108_v32 = vpop.eup %107 }
 0x13a   :  { %v110_v33 = vpop.eup %109  ;;  %v61_v36 = vmul.f32 0.6931472, %v108_v32  ;;  %v48_v44 = vpop.xlane.xlu0 %47 }
 0x13b   :  { %v69_v35 = vmul.f32 %v110_v33, %v56_v31 }
 0x13c   :  { %v64_v43 = vadd.f32 %v61_v36, %v18_v7 }
 0x13d   :  { %v112_v37 = vpop.eup %111  ;;  %v72_v38 = vsub.f32 1.0, %v69_v35 }
 0x13e   :  { %v114_v39 = vpop.eup %113  ;;  %v63_v40 = vmul.f32 0.6931472, %v112_v37  ;;  %v66_v49 = vsub.f32 %v64_v43, %v48_v44  ;;  %v51_v53 = vpop.xlane.xlu0 %50 }
 0x13f   :  { %v74_v41 = vmax.f32 %v72_v38, 0.0  ;;  %v71_v42 = vmul.f32 %v114_v39, %v59_v34 }
 0x140   :  { %v65_v50 = vadd.f32 %v63_v40, %v21_v10 }
 0x141   :  { %v76_v45 = vmul.f32 %v74_v41, %v74_v41  ;;  %v73_v46 = vsub.f32 1.0, %v71_v42 }
 0x142   :  { %v67_v55 = vsub.f32 %v65_v50, %v51_v53 }
 0x143   :  { %v78_v47 = vmul.f32 0.5, %v76_v45  ;;  %v75_v48 = vmax.f32 %v73_v46, 0.0 }
 0x145   :  { %v77_v51 = vmul.f32 %v75_v48, %v75_v48  ;;  %v80_v52 = vmul.f32 %v78_v47, %v66_v49 }
 0x147   :  { %v79_v54 = vmul.f32 0.5, %v77_v51  ;;  %94 = vst.msk [vmem:[%s159_s2] sm:$0xff] %vm93_vm3, %v80_v52 }
 0x149   :  { %v81_v56 = vmul.f32 %v79_v54, %v67_v55 }
 0x14b   :  { %95 = vst.msk [vmem:[%s159_s2 + $0x8] sm:$0xff] %vm93_vm3, %v81_v56 }

</bundles_post_ra>
